<compile_context>
chip_gen: v7x
topology: tpu7x:2x2x1
jax: 0.10.0
libtpu: 0.0.40
codegen_flags: <defaults>
</compile_context>

<pallas_src>
import functools

import jax
import jax.numpy as jnp
from jax.experimental import pallas as pl
from jax.experimental.pallas import tpu as pltpu


def _int_pow(x, n):
    """x**n for a small non-negative integer n via square-and-multiply (VPU only)."""
    if n == 0:
        return jnp.ones_like(x)
    result = None
    base = x
    while n:
        if n & 1:
            result = base if result is None else result * base
        n >>= 1
        if n:
            base = base * base
    return result


def _focal_loss_kernel(x_ref, t_ref, out_ref, acc_ref, *,
                       gamma, eps, hw, tile_c, acc_w, need_col_mask):
    """Accumulates per-row sums of log(x)*t*(1-x)^gamma over the spatial axis.

    Grid = (row_tiles [parallel], col_tiles [arbitrary, reduction axis last]).
    acc_ref is a lane-dense (TILE_R, acc_w) f32 scratch accumulator; the single
    cross-lane (XLU) reduce and the narrow (TILE_R, 1) output store happen only
    once per row tile, in the last-column-step epilogue.
    """
    j = pl.program_id(1)

    @pl.when(j == 0)
    def _():
        acc_ref[...] = jnp.zeros_like(acc_ref)

    g = float(gamma)
    use_int_pow = g.is_integer() and 0.0 <= g <= 8.0

    acc = acc_ref[...]
    # Walk the (TILE_R, TILE_C) block in lane-dense acc_w-wide chunks (static,
    # 128-aligned slices): temporaries stay vreg-scale and all adds are VPU ops.
    for c0 in range(0, tile_c, acc_w):
        x = x_ref[:, c0:c0 + acc_w].astype(jnp.float32)
        t = t_ref[:, c0:c0 + acc_w].astype(jnp.float32)
        x = jnp.clip(x, eps, 1.0 - eps)
        one_minus_x = 1.0 - x
        if use_int_pow:
            focal = _int_pow(one_minus_x, int(g))
        else:
            focal = jnp.power(one_minus_x, g)  # non-integer gamma: EUP fallback
        ce = jnp.log(x) * t * focal
        if need_col_mask:
            # Zero contributions from garbage lanes of the ragged edge block.
            col = (j * tile_c + c0
                   + jax.lax.broadcasted_iota(jnp.int32, ce.shape, 1))
            ce = jnp.where(col < hw, ce, 0.0)
        acc = acc + ce
    acc_ref[...] = acc

    @pl.when(j == pl.num_programs(1) - 1)
    def _():
        out_ref[...] = jnp.sum(acc, axis=-1, keepdims=True)


def _round_up(a, m):
    return -(-a // m) * m


# Per-input f32 block capped at 4 MiB. With double-buffered f32 inputs + bf16
# targets that is ~14 MiB of pipeline buffers: big enough to amortize per-step
# overhead on v5e/v6e/v7x, small enough for v7x's 64 MiB VMEM / 32 MiB limit.
_MAX_BLOCK_ELEMS = 1024 * 1024


def _pick_tiles(nc, hw):
    # Row tile: multiple of 8 (or the full row extent when nc < 8). When nc
    # allows, guarantee >= 2 row tiles so both v7x TensorCores get parallel work.
    if nc < 8:
        tile_r = nc
    elif nc < 16:
        tile_r = 8
    else:
        tile_r = min(512, _round_up(-(-nc // 2), 8))

    # Column tile: multiple of 128 (or the full spatial extent when hw < 128),
    # sized against the per-block element budget.
    if hw < 128:
        tile_c = hw
    else:
        budget = max(128, (_MAX_BLOCK_ELEMS // tile_r) // 128 * 128)
        tile_c = min(budget, (hw // 128) * 128)
    return tile_r, tile_c


def focal_loss_pallas(inputs, targets, pos_weight, gamma=2.0, eps=1e-6,
                      *, bf16_targets=True):
    """inputs, targets: (N, C, H, W); pos_weight: (C,). Returns scalar f32 loss.

    bf16_targets halves the targets HBM stream; it is exact for binary {0,1}
    masks (the usual focal-loss targets). Set False for arbitrary soft labels.
    """
    N, C, H, W = inputs.shape
    nc, hw = N * C, H * W

    # Lane-dense (N*C, H*W) slab; reshape of contiguous dims is layout-free.
    x2d = inputs.reshape(nc, hw)
    t2d = targets.reshape(nc, hw)
    if bf16_targets and t2d.dtype.itemsize > 2:
        t2d = t2d.astype(jnp.bfloat16)

    tile_r, tile_c = _pick_tiles(nc, hw)
    acc_w = tile_c if tile_c < 128 else 128
    grid = (pl.cdiv(nc, tile_r), pl.cdiv(hw, tile_c))   # reduction axis last
    need_col_mask = (hw % tile_c) != 0                  # ragged edge column block

    kernel = functools.partial(
        _focal_loss_kernel, gamma=float(gamma), eps=float(eps), hw=hw,
        tile_c=tile_c, acc_w=acc_w, need_col_mask=need_col_mask)

    row_sums = pl.pallas_call(
        kernel,
        out_shape=jax.ShapeDtypeStruct((nc, 1), jnp.float32),
        grid_spec=pltpu.PrefetchScalarGridSpec(
            num_scalar_prefetch=0,
            grid=grid,
            in_specs=[
                pl.BlockSpec((tile_r, tile_c), lambda i, j: (i, j)),  # inputs
                pl.BlockSpec((tile_r, tile_c), lambda i, j: (i, j)),  # targets
            ],
            out_specs=pl.BlockSpec((tile_r, 1), lambda i, j: (i, 0)),  # row sums
            scratch_shapes=[pltpu.VMEM((tile_r, acc_w), jnp.float32)],
        ),
        compiler_params=pltpu.CompilerParams(
            dimension_semantics=("parallel", "arbitrary"),
            vmem_limit_bytes=32 * 1024 * 1024,
        ),
    )(x2d, t2d)

    # Tiny epilogue: per-row pos_weight, negate, and 1/(H*W) + mean scaling,
    # each applied exactly once.
    pw_row = jnp.broadcast_to(
        pos_weight.astype(jnp.float32)[None, :], (N, C)).reshape(nc, 1)
    return -jnp.sum(pw_row * row_sums) * (1.0 / (hw * nc))


def focal_loss_ref(inputs, targets, pos_weight, gamma=2.0, eps=1e-6):
    """Pure-JAX reference mirroring the PyTorch forward."""
    x = jnp.clip(inputs, eps, 1.0 - eps)
    ce = jnp.log(x) * targets * jnp.power(1.0 - x, gamma)
    ce = ce.sum(axis=(2, 3)) / (inputs.shape[2] * inputs.shape[3])
    return -jnp.mean(pos_weight * ce)


def _run_case(key, N, C, H, W, gamma=2.0, eps=1e-6):
    k1, k2 = jax.random.split(key)
    inputs = jax.nn.sigmoid(jax.random.normal(k1, (N, C, H, W), dtype=jnp.float32))
    targets = (jax.random.uniform(k2, (N, C, H, W)) > 0.5).astype(jnp.float32)
    pos_weight = (0.5 + 0.25 * jnp.arange(C, dtype=jnp.float32))
    loss = focal_loss_pallas(inputs, targets, pos_weight, gamma=gamma, eps=eps)
    loss = jax.block_until_ready(loss)
    ref = focal_loss_ref(inputs, targets, pos_weight, gamma=gamma, eps=eps)
    assert jnp.allclose(loss, ref, rtol=1e-5, atol=1e-6), ((N, C, H, W), loss, ref)


if __name__ == "__main__":
    key = jax.random.PRNGKey(0)
    keys = jax.random.split(key, 3)

    # Primary shape from the module spec: (2, 4, 16, 16), aligned tiles.
    _run_case(keys[0], 2, 4, 16, 16)
    # Small sub-(8,128) shape: full-extent blocks (nc=6, hw=99).
    _run_case(keys[1], 2, 3, 9, 11)
    # Unaligned spatial extent (hw=200): ragged edge column block + in-kernel mask.
    _run_case(keys[2], 2, 4, 10, 20)

    print("KERNEL_OK")
</pallas_src>

<mosaic_0001>
module attributes {stable_mosaic.version = 11 : i64} {
  func.func @_focal_loss_kernel(%arg0: i32, %arg1: i32, %arg2: memref<8x256xf32, #tpu.memory_space<vmem>>, %arg3: memref<8x256xbf16, #tpu.memory_space<vmem>>, %arg4: memref<8x1xf32, #tpu.memory_space<vmem>>, %arg5: memref<8x128xf32, #tpu.memory_space<vmem>>) attributes {dimension_semantics = [#tpu.dimension_semantics<parallel>, #tpu.dimension_semantics<arbitrary>], iteration_bounds = array<i64: 1, 1>, scalar_prefetch = 0 : i64, scratch_operands = 1 : i64, tpu.core_type = #tpu.core_type<tc>, window_params = [{transform_indices = @transform_0, window_bounds = array<i64: 8, 256>}, {transform_indices = @transform_1, window_bounds = array<i64: 8, 256>}, {transform_indices = @transform_2, window_bounds = array<i64: 8, 1>}]} {
    %c0_i32 = arith.constant 0 : i32
    %0 = arith.cmpi eq, %arg1, %c0_i32 : i32
    %1 = arith.extui %0 : i1 to i32
    %c0_i32_0 = arith.constant 0 : i32
    %2 = arith.cmpi ne, %1, %c0_i32_0 : i32
    scf.if %2 {
      %cst_18 = arith.constant 0.000000e+00 : f32
      %36 = vector.broadcast %cst_18 : f32 to vector<8x128xf32>
      %c0_19 = arith.constant 0 : index
      %c0_20 = arith.constant 0 : index
      %37 = vector.load %arg5[%c0_19, %c0_20] : memref<8x128xf32, #tpu.memory_space<vmem>>, vector<8x128xf32>
      tpu.vector_store %arg5[%c0_19, %c0_20], %36 {strides = array<i32>} : memref<8x128xf32, #tpu.memory_space<vmem>>, vector<8x128xf32>,
    } else {
    }
    %c0 = arith.constant 0 : index
    %c0_1 = arith.constant 0 : index
    %3 = vector.load %arg5[%c0, %c0_1] : memref<8x128xf32, #tpu.memory_space<vmem>>, vector<8x128xf32>
    %c0_2 = arith.constant 0 : index
    %c0_3 = arith.constant 0 : index
    %4 = vector.load %arg2[%c0_2, %c0_3] : memref<8x256xf32, #tpu.memory_space<vmem>>, vector<8x128xf32>
    %c0_4 = arith.constant 0 : index
    %c0_5 = arith.constant 0 : index
    %5 = vector.load %arg3[%c0_4, %c0_5] : memref<8x256xbf16, #tpu.memory_space<vmem>>, vector<8x128xbf16>
    %6 = arith.extf %5 : vector<8x128xbf16> to vector<8x128xf32>
    %cst = arith.constant 9.99999997E-7 : f32
    %cst_6 = arith.constant 0.999998986 : f32
    %7 = vector.broadcast %cst : f32 to vector<8x128xf32>
    %8 = arith.maximumf %7, %4 : vector<8x128xf32>
    %9 = vector.broadcast %cst_6 : f32 to vector<8x128xf32>
    %10 = arith.minimumf %9, %8 : vector<8x128xf32>
    %cst_7 = arith.constant 1.000000e+00 : f32
    %11 = vector.broadcast %cst_7 : f32 to vector<8x128xf32>
    %12 = arith.subf %11, %10 : vector<8x128xf32>
    %13 = arith.mulf %12, %12 : vector<8x128xf32>
    %14 = math.log %10 : vector<8x128xf32>
    %15 = arith.mulf %14, %6 : vector<8x128xf32>
    %16 = arith.mulf %15, %13 : vector<8x128xf32>
    %17 = arith.addf %3, %16 : vector<8x128xf32>
    %c0_8 = arith.constant 0 : index
    %c128 = arith.constant 128 : index
    %18 = vector.load %arg2[%c0_8, %c128] : memref<8x256xf32, #tpu.memory_space<vmem>>, vector<8x128xf32>
    %c0_9 = arith.constant 0 : index
    %c128_10 = arith.constant 128 : index
    %19 = vector.load %arg3[%c0_9, %c128_10] : memref<8x256xbf16, #tpu.memory_space<vmem>>, vector<8x128xbf16>
    %20 = arith.extf %19 : vector<8x128xbf16> to vector<8x128xf32>
    %cst_11 = arith.constant 9.99999997E-7 : f32
    %cst_12 = arith.constant 0.999998986 : f32
    %21 = vector.broadcast %cst_11 : f32 to vector<8x128xf32>
    %22 = arith.maximumf %21, %18 : vector<8x128xf32>
    %23 = vector.broadcast %cst_12 : f32 to vector<8x128xf32>
    %24 = arith.minimumf %23, %22 : vector<8x128xf32>
    %cst_13 = arith.constant 1.000000e+00 : f32
    %25 = vector.broadcast %cst_13 : f32 to vector<8x128xf32>
    %26 = arith.subf %25, %24 : vector<8x128xf32>
    %27 = arith.mulf %26, %26 : vector<8x128xf32>
    %28 = math.log %24 : vector<8x128xf32>
    %29 = arith.mulf %28, %20 : vector<8x128xf32>
    %30 = arith.mulf %29, %27 : vector<8x128xf32>
    %31 = arith.addf %17, %30 : vector<8x128xf32>
    %c0_14 = arith.constant 0 : index
    %c0_15 = arith.constant 0 : index
    %32 = vector.load %arg5[%c0_14, %c0_15] : memref<8x128xf32, #tpu.memory_space<vmem>>, vector<8x128xf32>
    tpu.vector_store %arg5[%c0_14, %c0_15], %31 {strides = array<i32>} : memref<8x128xf32, #tpu.memory_space<vmem>>, vector<8x128xf32>,
    %c0_i32_16 = arith.constant 0 : i32
    %33 = arith.cmpi eq, %arg1, %c0_i32_16 : i32
    %34 = arith.extui %33 : i1 to i32
    %c0_i32_17 = arith.constant 0 : i32
    %35 = arith.cmpi ne, %34, %c0_i32_17 : i32
    scf.if %35 {
      %cst_18 = arith.constant dense<0.000000e+00> : vector<8xf32>
      %36 = vector.multi_reduction <add>, %31, %cst_18 [1] : vector<8x128xf32> to vector<8xf32>
      %37 = vector.shape_cast %36 : vector<8xf32> to vector<8x1xf32>
      %c0_19 = arith.constant 0 : index
      %c0_20 = arith.constant 0 : index
      %38 = vector.load %arg4[%c0_19, %c0_20] : memref<8x1xf32, #tpu.memory_space<vmem>>, vector<8x1xf32>
      tpu.vector_store %arg4[%c0_19, %c0_20], %37 {strides = array<i32>} : memref<8x1xf32, #tpu.memory_space<vmem>>, vector<8x1xf32>,
    } else {
    }
    return
  }
  func.func @transform_0(%arg0: i32, %arg1: i32) -> (i32, i32) {
    %c0_i32 = arith.constant 0 : i32
    return %arg0, %arg1 : i32, i32
  }
  func.func @transform_1(%arg0: i32, %arg1: i32) -> (i32, i32) {
    %c0_i32 = arith.constant 0 : i32
    return %arg0, %arg1 : i32, i32
  }
  func.func @transform_2(%arg0: i32, %arg1: i32) -> (i32, i32) {
    %c0_i32 = arith.constant 0 : i32
    %c0_i32_0 = arith.constant 0 : i32
    return %arg0, %c0_i32 : i32, i32
  }
}

</mosaic_0001>

<bundles_post_ra>
// kernel: tpu_custom_call.1
= control target key start
LH: loop header
LB: loop body
LE: loop exit
PB: predicated region body
PF: predicated region fallthrough
CT: control target
= control target key end

     0   :  { %7 = vsyncpa [#allocation4], 0  ;;  %s177_s0 = inlined_call_operand.hbm [shape: f32[8,256], index: 0, kind: input, shape index: {}]   ;;  %s178_s1 = inlined_call_operand.hbm [shape: bf16[8,256], index: 1, kind: input, shape index: {}]   ;;  %s179_s2 = inlined_call_operand.vmem [shape: f32[8,1], index: 2, kind: output, shape index: {}]  }
   0x1   :  { %8 = vsyncpa [#allocation6], 0  ;;  %s133_s9 = smov [#allocation3]   ;;  %s134_s11 = smov [#allocation5]  }
   0x2   :  { %s15_s10 = sshll.u32 %s133_s9, 4  ;;  %s25_s12 = sshll.u32 %s134_s11, 4  ;;  %s16_s10 = int_to_ptr.vmem [resolvable:$true] %s15_s10  ;;  %s26_s12 = int_to_ptr.vmem [resolvable:$true] %s25_s12 }
   0x3   :  { %s85_s15 = scalar_lea.hbm %s177_s0, 256 }
   0x4   :  { %p86_p0 = scmp.ne.s32.totalorder %s177_s0, %s85_s15  ;;  %p89_p1 = scmp.lt.u32.totalorder %s85_s15, %s177_s0 }
   0x6   :  { %p91_p2 = pnand %p89_p1, %p86_p0 }
   0x8   :  { %94 = shalt.err (!%p91_p2)
}
   0x9   :  { %s95_s20 = scalar_lea.vmem %s16_s10, 256  ;;  %p100_p4 = scmp.lt.s32.totalorder %s16_s10, %s16_s10 }
   0xa   :  { %p96_p3 = scmp.ne.s32.totalorder %s16_s10, %s95_s20  ;;  %p101_p5 = scmp.lt.s32.totalorder %s95_s20, %s95_s20 }
   0xc   :  { %p102_p6 = por %p101_p5, %p100_p4 }
   0xe   :  { %p103_p7 = pnand %p102_p6, %p96_p3 }
  0x10   :  { %106 = shalt.err (!%p103_p7)
}
  0x11   :  { %18 = dma.hbm_to_vmem [thread:$0]  %s177_s0, 256, %s16_s10, [#allocation4]  }
  0x12   :  { %s107_s25 = scalar_lea.hbm %s178_s1, 128 }
  0x13   :  { %p108_p8 = scmp.ne.s32.totalorder %s178_s1, %s107_s25  ;;  %p111_p9 = scmp.lt.u32.totalorder %s107_s25, %s178_s1 }
  0x15   :  { %p113_p10 = pnand %p111_p9, %p108_p8 }
  0x17   :  { %116 = shalt.err (!%p113_p10)
}
  0x18   :  { %s117_s30 = scalar_lea.vmem %s26_s12, 128  ;;  %p122_p12 = scmp.lt.s32.totalorder %s26_s12, %s26_s12 }
  0x19   :  { %p118_p11 = scmp.ne.s32.totalorder %s26_s12, %s117_s30  ;;  %p123_p13 = scmp.lt.s32.totalorder %s117_s30, %s117_s30 }
  0x1b   :  { %p124_p0 = por %p123_p13, %p122_p12 }
  0x1d   :  { %p125_p1 = pnand %p124_p0, %p118_p11 }
  0x1f   :  { %128 = shalt.err (!%p125_p1)
}
  0x20   :  { %28 = dma.hbm_to_vmem [thread:$0]  %s178_s1, 128, %s26_s12, [#allocation6]  }
  0x21   :  { %129 = dma.done.wait [#allocation4], 256  }
  0x22   :  { %130 = vsyncadd [#allocation4], 4294967040 }
  0x23   :  { %131 = dma.done.wait [#allocation6], 128  }
  0x24   :  { %132 = vsyncadd [#allocation6], 4294967168  ;;  %v41_v0 = vld [vmem:[#allocation3] sm:$0xff]  ;;  %v53_v1 = vld [vmem:[#allocation3 + $0x8] sm:$0xff]  ;;  %vm71_vm0 = vcmask 7168  }
  0x25   :  { %v44_v2 = vmax.f32 %v41_v0, 1e-06  ;;  %v56_v3 = vmax.f32 %v53_v1, 1e-06  ;;  %v42_v6 = vld [vmem:[#allocation5] sm:$0xff]  }
  0x26   :  { %v43_v9 = vunpack.c.l.bf16 %v42_v6  ;;  %v55_v11 = vunpack.c.h.bf16 %v42_v6 }
  0x27   :  { %v45_v4 = vmin.f32 %v44_v2, 0.999999  ;;  %v57_v5 = vmin.f32 %v56_v3, 0.999999 }
  0x29   :  { %81 = vlog2.f32 %v45_v4  ;;  %v46_v7 = vsub.f32 1.0, %v45_v4  ;;  %v58_v8 = vsub.f32 1.0, %v57_v5 }
  0x2a   :  { %83 = vlog2.f32 %v57_v5 }
  0x2b   :  { %v47_v13 = vmul.f32 %v46_v7, %v46_v7  ;;  %v59_v15 = vmul.f32 %v58_v8, %v58_v8 }
  0x33   :  { %v82_v10 = vpop.eup %81 }
  0x34   :  { %v84_v12 = vpop.eup %83  ;;  %v49_v14 = vmul.f32 0.6931472, %v82_v10 }
  0x35   :  { %v61_v16 = vmul.f32 0.6931472, %v84_v12 }
  0x36   :  { %v50_v17 = vmul.f32 %v49_v14, %v43_v9 }
  0x37   :  { %v62_v18 = vmul.f32 %v61_v16, %v55_v11 }
  0x38   :  { %v51_v19 = vmul.f32 %v50_v17, %v47_v13 }
  0x39   :  { %v63_v20 = vmul.f32 %v62_v18, %v59_v15 }
  0x3b   :  { %v64_v21 = vadd.f32 %v63_v20, %v51_v19 }
  0x3d   :  { %69 = vadd.xlane.f32.xlu0 %v64_v21 }
  0xca   :  { %v70_v22 = vpop.xlane.xlu0 %69 }
  0xcb   :  { %72 = vst.msk [vmem:[%s179_s2] sm:$0xff] %vm71_vm0, %v70_v22 }
  0xcc   :  { %77 = vsyncpa [#allocation4], 1 }
  0xcd   :  { %78 = vsyncpa [#allocation6], 1 }

</bundles_post_ra>
